<compile_context>
chip_gen: v7x
topology: tpu7x:2x2x1
jax: 0.10.0
libtpu: 0.0.40
codegen_flags: <defaults>
</compile_context>

<pallas_src>
import math

import jax
import jax.numpy as jnp
import numpy as np
from jax.experimental import pallas as pl
from jax.experimental.pallas import tpu as pltpu

# ---- configuration (mirrors CNNNet.__init__ arguments + module globals) ----
NUM_FEATURES = 4            # num_features (module-level global in the torch code)
SEQLEN = 32                 # seqlen       (module-level global in the torch code)
HIDDEN_LAYERS = (8, 16)     # hidden_layers
KERNEL_SIZE = (3, 3)        # kernel_size
STRIDE = (2, 2)             # stride
POOLING = "max"             # pooling
NUM_TARGET_LABEL = 5        # num_target_label
NEG_SLOPE = 0.01            # nn.LeakyReLU() default negative_slope


def _conv_len(L, k, s):
    # padding=0, dilation=1, as in the module
    return math.floor((L - (k - 1) - 1) / s + 1)


def _shape_trace():
    """Static L per stage (needed to size the flatten / final linear)."""
    L = SEQLEN
    for k, s in zip(KERNEL_SIZE, STRIDE):
        L = _conv_len(L, k, s)       # Conv1d
        L = _conv_len(L, k, s)       # MaxPool1d(kernel_size=k, stride=s)
    return L


FINAL_L = _shape_trace()
FINAL_C = HIDDEN_LAYERS[-1]
FINAL_FLAT = FINAL_C * FINAL_L       # cur_out_channels * pool_L_out


def _round_up(a, b):
    return ((a + b - 1) // b) * b


def _lrelu(t):
    return jnp.where(t >= 0, t, NEG_SLOPE * t)


# --------------------------- Pallas kernel ---------------------------------
def cnnnet_kernel(x_ref, cw0, cb0, cw1, cb1, fw1, fb1, fw2, fb2, out_ref):
    """All compute (convs, pooling, activations, linears) runs in-kernel.

    x_ref : (SEQLEN, TN, C_in)              f32
    cw*   : (k*C_in, C_out) im2col weights  f32 ; cb* : (1, C_out) f32
    fw1   : (FINAL_L*FINAL_C, 1024) rows ordered l*C+c ; fb1 : (1, 1024)
    fw2   : (1024, num_target_label)        f32 ; fb2 : (1, num_target_label)
    out_ref: (TN, num_target_label)         f32
    """

    def tap_slices(h, k, s, lout):
        # Positions j + l*s for l in [0, lout).  Phase-decompose (pad L up to a
        # multiple of s, reshape, pick phase) so only unit-stride slices and
        # layout-preserving reshapes are emitted (no strided extracts).
        L, tn, C = h.shape
        lp = _round_up(L, s)
        if lp != L:
            h = jnp.concatenate(
                [h, jnp.zeros((lp - L, tn, C), h.dtype)], axis=0)  # pad rows, never read
        h4 = h.reshape(lp // s, s, tn, C)
        taps = []
        for j in range(k):
            q, p = divmod(j, s)
            taps.append(h4[q:q + lout, p])          # (lout, tn, C)
        return taps

    def conv1d(h, w_ref, b_ref, k, s):
        L, tn, C = h.shape
        lout = (L - k) // s + 1
        taps = tap_slices(h, k, s, lout)
        # im2col slab: (lout*tn, k*C); the (lout, tn) -> lout*tn merge is
        # layout-preserving since tn is a multiple of 8.
        a = jnp.concatenate(taps, axis=-1).reshape(lout * tn, k * C)
        y = jnp.dot(a, w_ref[...], preferred_element_type=jnp.float32)
        y = y + b_ref[...]                           # bias added once per layer
        return y.reshape(lout, tn, w_ref.shape[1])

    def maxpool1d(h, k, s):
        L, tn, C = h.shape
        lout = (L - k) // s + 1
        taps = tap_slices(h, k, s, lout)
        m = taps[0]
        for t in taps[1:]:
            m = jnp.maximum(m, t)
        return m

    h = x_ref[...]                                   # (L0, TN, C_in)
    for w_ref, b_ref, k, s in ((cw0, cb0, KERNEL_SIZE[0], STRIDE[0]),
                               (cw1, cb1, KERNEL_SIZE[1], STRIDE[1])):
        h = conv1d(h, w_ref, b_ref, k, s)            # Conv1d   (single GEMM)
        h = maxpool1d(h, k, s)                       # MaxPool1d
        h = _lrelu(h)                                # LeakyReLU (Dropout = identity)

    # Flatten to (TN, FINAL_L*FINAL_C) in l-major order by concatenating whole
    # (TN, C) slabs along lanes (fw1 rows are pre-permuted in the wrapper to
    # absorb PyTorch's c*L+l ordering).  With FINAL_L == 1 this is a no-op.
    L = h.shape[0]
    flat = h[0] if L == 1 else jnp.concatenate([h[l] for l in range(L)], axis=-1)

    # final_layer: Linear -> LeakyReLU -> (Dropout) -> Linear
    z = jnp.dot(flat, fw1[...], preferred_element_type=jnp.float32) + fb1[...]
    z = _lrelu(z)
    out_ref[...] = jnp.dot(z, fw2[...], preferred_element_type=jnp.float32) + fb2[...]


# --------------------------- wrapper (glue) ---------------------------------
def cnnnet_forward(x, params, *, batch_tile=None):
    """x: (N, SEQLEN, NUM_FEATURES); params use PyTorch weight layouts."""
    N = x.shape[0]
    # Bigger default tile: amortizes per-grid-step overhead and gives the head
    # GEMMs a larger M; VMEM use stays far below the scoped limit.
    tn = batch_tile if batch_tile is not None else min(256, _round_up(N, 8))
    tn = _round_up(tn, 8)                 # full sublane occupancy in the GEMMs
    n_pad = _round_up(max(N, tn), tn)     # pad batch so every grid block is full

    # PyTorch forward consumes (N, C, L) from x viewed as (N, L, C); the kernel
    # wants (L, N, C): sequence leading, batch on sublanes, channels on lanes.
    x_lnc = jnp.transpose(x.astype(jnp.float32), (1, 0, 2))
    if n_pad != N:
        x_lnc = jnp.pad(x_lnc, ((0, 0), (0, n_pad - N), (0, 0)))

    args = [x_lnc]
    for (w, b), k in zip(params["convs"], KERNEL_SIZE):   # torch Conv1d w: (Cout, Cin, k)
        c_out, c_in, _ = w.shape
        # -> im2col layout (k*Cin, Cout), rows ordered j*Cin + c
        args.append(jnp.transpose(w, (2, 1, 0)).reshape(k * c_in, c_out)
                    .astype(jnp.float32))
        args.append(b.reshape(1, -1).astype(jnp.float32))

    (w1, b1), (w2, b2) = params["linears"]                 # torch Linear w: (out, in)
    # torch fw1 columns ordered c*FINAL_L + l -> rows ordered l*FINAL_C + c
    w1p = jnp.transpose(w1.reshape(w1.shape[0], FINAL_C, FINAL_L), (2, 1, 0))
    args.append(w1p.reshape(FINAL_L * FINAL_C, w1.shape[0]).astype(jnp.float32))
    args.append(b1.reshape(1, -1).astype(jnp.float32))
    args.append(w2.T.astype(jnp.float32))
    args.append(b2.reshape(1, -1).astype(jnp.float32))

    def _full(shape):
        nd = len(shape)
        # Constant block index -> fetched once, stays resident across grid steps.
        return pl.BlockSpec(shape, lambda i, nd=nd: (0,) * nd)

    in_specs = [pl.BlockSpec((SEQLEN, tn, NUM_FEATURES), lambda i: (0, i, 0))]
    in_specs += [_full(a.shape) for a in args[1:]]

    out = pl.pallas_call(
        cnnnet_kernel,
        out_shape=jax.ShapeDtypeStruct((n_pad, NUM_TARGET_LABEL), jnp.float32),
        grid=(n_pad // tn,),
        in_specs=in_specs,
        out_specs=pl.BlockSpec((tn, NUM_TARGET_LABEL), lambda i: (i, 0)),
        compiler_params=pltpu.CompilerParams(
            dimension_semantics=("parallel",)),   # megacore-shardable on v7x
    )(*args)
    return out[:N]


# --------------------------- pure-JAX reference -----------------------------
def reference_forward(x, params):
    N = x.shape[0]
    h = jnp.transpose(x.reshape(N, SEQLEN, NUM_FEATURES), (0, 2, 1))  # (N, C, L)
    for (w, b), k, s in zip(params["convs"], KERNEL_SIZE, STRIDE):
        Cout, Cin, _ = w.shape
        L = h.shape[-1]
        lout = _conv_len(L, k, s)
        cols = []
        for l in range(lout):
            patch = h[:, :, l * s:l * s + k].reshape(N, Cin * k)
            cols.append(patch @ w.reshape(Cout, Cin * k).T + b)
        h = jnp.stack(cols, axis=-1)
        L = h.shape[-1]
        lout = _conv_len(L, k, s)
        cols = [jnp.max(h[:, :, l * s:l * s + k], axis=-1) for l in range(lout)]
        h = jnp.stack(cols, axis=-1)
        h = jnp.where(h >= 0, h, NEG_SLOPE * h)
    flat = h.reshape(N, -1)
    (w1, b1), (w2, b2) = params["linears"]
    z = flat @ w1.T + b1
    z = jnp.where(z >= 0, z, NEG_SLOPE * z)
    return z @ w2.T + b2


# --------------------------- parameter init ---------------------------------
def init_params(key):
    ks = jax.random.split(key, 8)
    convs = []
    last_c = NUM_FEATURES
    i = 0
    for c_out, k in zip(HIDDEN_LAYERS, KERNEL_SIZE):
        scale = 1.0 / math.sqrt(last_c * k)
        w = jax.random.normal(ks[i], (c_out, last_c, k), jnp.float32) * scale
        b = jax.random.normal(ks[i + 1], (c_out,), jnp.float32) * scale
        convs.append((w, b))
        last_c = c_out
        i += 2
    linears = []
    dims = [(FINAL_FLAT, 1024), (1024, NUM_TARGET_LABEL)]
    for d_in, d_out in dims:
        scale = 1.0 / math.sqrt(d_in)
        w = jax.random.normal(ks[i], (d_out, d_in), jnp.float32) * scale
        b = jax.random.normal(ks[i + 1], (d_out,), jnp.float32) * scale
        linears.append((w, b))
        i += 2
    return {"convs": convs, "linears": linears}


if __name__ == "__main__":
    key = jax.random.PRNGKey(0)
    k_x, k_p = jax.random.split(key)
    params = init_params(k_p)

    N = 2
    x = jax.random.normal(k_x, (N, SEQLEN, NUM_FEATURES), jnp.float32)

    fwd = jax.jit(cnnnet_forward)          # fuse wrapper glue with the pallas call
    out = jax.block_until_ready(fwd(x, params))

    ref = reference_forward(x, params)
    np.testing.assert_allclose(np.asarray(out), np.asarray(ref), rtol=1e-4, atol=1e-4)

    assert out.shape == (N, NUM_TARGET_LABEL)
    print("KERNEL_OK")
</pallas_src>

<mosaic_0001>
module attributes {stable_mosaic.version = 11 : i64} {
  func.func @cnnnet_kernel(%arg0: i32, %arg1: memref<32x8x4xf32, #tpu.memory_space<vmem>>, %arg2: memref<12x8xf32, #tpu.memory_space<vmem>>, %arg3: memref<1x8xf32, #tpu.memory_space<vmem>>, %arg4: memref<24x16xf32, #tpu.memory_space<vmem>>, %arg5: memref<1x16xf32, #tpu.memory_space<vmem>>, %arg6: memref<16x1024xf32, #tpu.memory_space<vmem>>, %arg7: memref<1x1024xf32, #tpu.memory_space<vmem>>, %arg8: memref<1024x5xf32, #tpu.memory_space<vmem>>, %arg9: memref<1x5xf32, #tpu.memory_space<vmem>>, %arg10: memref<8x5xf32, #tpu.memory_space<vmem>>) attributes {dimension_semantics = [#tpu.dimension_semantics<parallel>], iteration_bounds = array<i64: 1>, scalar_prefetch = 0 : i64, scratch_operands = 0 : i64, tpu.core_type = #tpu.core_type<tc>, window_params = [{transform_indices = @transform_0, window_bounds = array<i64: 32, 8, 4>}, {pipeline_mode = #tpu.pipeline_mode<synchronous>, transform_indices = @transform_1, window_bounds = array<i64: 12, 8>}, {pipeline_mode = #tpu.pipeline_mode<synchronous>, transform_indices = @transform_2, window_bounds = array<i64: 1, 8>}, {pipeline_mode = #tpu.pipeline_mode<synchronous>, transform_indices = @transform_3, window_bounds = array<i64: 24, 16>}, {pipeline_mode = #tpu.pipeline_mode<synchronous>, transform_indices = @transform_4, window_bounds = array<i64: 1, 16>}, {pipeline_mode = #tpu.pipeline_mode<synchronous>, transform_indices = @transform_5, window_bounds = array<i64: 16, 1024>}, {pipeline_mode = #tpu.pipeline_mode<synchronous>, transform_indices = @transform_6, window_bounds = array<i64: 1, 1024>}, {pipeline_mode = #tpu.pipeline_mode<synchronous>, transform_indices = @transform_7, window_bounds = array<i64: 1024, 5>}, {pipeline_mode = #tpu.pipeline_mode<synchronous>, transform_indices = @transform_8, window_bounds = array<i64: 1, 5>}, {transform_indices = @transform_9, window_bounds = array<i64: 8, 5>}]} {
    %c0 = arith.constant 0 : index
    %c0_0 = arith.constant 0 : index
    %c0_1 = arith.constant 0 : index
    %0 = vector.load %arg1[%c0, %c0_0, %c0_1] : memref<32x8x4xf32, #tpu.memory_space<vmem>>, vector<32x8x4xf32>
    %1 = vector.shape_cast %0 : vector<32x8x4xf32> to vector<16x2x8x4xf32>
    %2 = vector.extract_strided_slice %1 {offsets = [0, 0, 0, 0], sizes = [15, 1, 8, 4], strides = [1, 1, 1, 1]} : vector<16x2x8x4xf32> to vector<15x1x8x4xf32>
    %3 = vector.shape_cast %2 : vector<15x1x8x4xf32> to vector<15x8x4xf32>
    %4 = vector.extract_strided_slice %1 {offsets = [0, 1, 0, 0], sizes = [15, 1, 8, 4], strides = [1, 1, 1, 1]} : vector<16x2x8x4xf32> to vector<15x1x8x4xf32>
    %5 = vector.shape_cast %4 : vector<15x1x8x4xf32> to vector<15x8x4xf32>
    %6 = vector.extract_strided_slice %1 {offsets = [1, 0, 0, 0], sizes = [15, 1, 8, 4], strides = [1, 1, 1, 1]} : vector<16x2x8x4xf32> to vector<15x1x8x4xf32>
    %7 = vector.shape_cast %6 : vector<15x1x8x4xf32> to vector<15x8x4xf32>
    %8 = tpu.concatenate %3, %5, %7 in 2 : vector<15x8x4xf32>, vector<15x8x4xf32>, vector<15x8x4xf32> -> vector<15x8x12xf32>
    %9 = vector.shape_cast %8 : vector<15x8x12xf32> to vector<120x12xf32>
    %c0_2 = arith.constant 0 : index
    %c0_3 = arith.constant 0 : index
    %10 = vector.load %arg2[%c0_2, %c0_3] : memref<12x8xf32, #tpu.memory_space<vmem>>, vector<12x8xf32>
    %cst = arith.constant dense<0.000000e+00> : vector<120x8xf32>
    %11 = tpu.matmul %9, %10, %cst {dimension_numbers = #tpu.dot_dimension_numbers<[1], [0], [0], [1], [0, 0, 1, 1], [], []>} : vector<120x12xf32>, vector<12x8xf32>, vector<120x8xf32> -> vector<120x8xf32>
    %c0_4 = arith.constant 0 : index
    %c0_5 = arith.constant 0 : index
    %12 = vector.load %arg3[%c0_4, %c0_5] : memref<1x8xf32, #tpu.memory_space<vmem>>, vector<1x8xf32>
    %13 = vector.broadcast %12 : vector<1x8xf32> to vector<120x8xf32>
    %14 = arith.addf %11, %13 : vector<120x8xf32>
    %15 = vector.shape_cast %14 : vector<120x8xf32> to vector<15x8x8xf32>
    %cst_6 = arith.constant 0.000000e+00 : f32
    %16 = vector.broadcast %cst_6 : f32 to vector<1x8x8xf32>
    %17 = tpu.concatenate %15, %16 in 0 : vector<15x8x8xf32>, vector<1x8x8xf32> -> vector<16x8x8xf32>
    %18 = vector.shape_cast %17 : vector<16x8x8xf32> to vector<8x2x8x8xf32>
    %19 = vector.extract_strided_slice %18 {offsets = [0, 0, 0, 0], sizes = [7, 1, 8, 8], strides = [1, 1, 1, 1]} : vector<8x2x8x8xf32> to vector<7x1x8x8xf32>
    %20 = vector.shape_cast %19 : vector<7x1x8x8xf32> to vector<7x8x8xf32>
    %21 = vector.extract_strided_slice %18 {offsets = [0, 1, 0, 0], sizes = [7, 1, 8, 8], strides = [1, 1, 1, 1]} : vector<8x2x8x8xf32> to vector<7x1x8x8xf32>
    %22 = vector.shape_cast %21 : vector<7x1x8x8xf32> to vector<7x8x8xf32>
    %23 = vector.extract_strided_slice %18 {offsets = [1, 0, 0, 0], sizes = [7, 1, 8, 8], strides = [1, 1, 1, 1]} : vector<8x2x8x8xf32> to vector<7x1x8x8xf32>
    %24 = vector.shape_cast %23 : vector<7x1x8x8xf32> to vector<7x8x8xf32>
    %25 = arith.maximumf %20, %22 : vector<7x8x8xf32>
    %26 = arith.maximumf %25, %24 : vector<7x8x8xf32>
    %cst_7 = arith.constant 0.000000e+00 : f32
    %27 = vector.broadcast %cst_7 : f32 to vector<7x8x8xf32>
    %28 = arith.cmpf oge, %26, %27 : vector<7x8x8xf32>
    %cst_8 = arith.constant 0.00999999977 : f32
    %29 = vector.broadcast %cst_8 : f32 to vector<7x8x8xf32>
    %30 = arith.mulf %29, %26 : vector<7x8x8xf32>
    %31 = arith.select %28, %26, %30 : vector<7x8x8xi1>, vector<7x8x8xf32>
    %cst_9 = arith.constant 0.000000e+00 : f32
    %32 = vector.broadcast %cst_9 : f32 to vector<1x8x8xf32>
    %33 = tpu.concatenate %31, %32 in 0 : vector<7x8x8xf32>, vector<1x8x8xf32> -> vector<8x8x8xf32>
    %34 = vector.shape_cast %33 : vector<8x8x8xf32> to vector<4x2x8x8xf32>
    %35 = vector.extract_strided_slice %34 {offsets = [0, 0, 0, 0], sizes = [3, 1, 8, 8], strides = [1, 1, 1, 1]} : vector<4x2x8x8xf32> to vector<3x1x8x8xf32>
    %36 = vector.shape_cast %35 : vector<3x1x8x8xf32> to vector<3x8x8xf32>
    %37 = vector.extract_strided_slice %34 {offsets = [0, 1, 0, 0], sizes = [3, 1, 8, 8], strides = [1, 1, 1, 1]} : vector<4x2x8x8xf32> to vector<3x1x8x8xf32>
    %38 = vector.shape_cast %37 : vector<3x1x8x8xf32> to vector<3x8x8xf32>
    %39 = vector.extract_strided_slice %34 {offsets = [1, 0, 0, 0], sizes = [3, 1, 8, 8], strides = [1, 1, 1, 1]} : vector<4x2x8x8xf32> to vector<3x1x8x8xf32>
    %40 = vector.shape_cast %39 : vector<3x1x8x8xf32> to vector<3x8x8xf32>
    %41 = tpu.concatenate %36, %38, %40 in 2 : vector<3x8x8xf32>, vector<3x8x8xf32>, vector<3x8x8xf32> -> vector<3x8x24xf32>
    %42 = vector.shape_cast %41 : vector<3x8x24xf32> to vector<24x24xf32>
    %c0_10 = arith.constant 0 : index
    %c0_11 = arith.constant 0 : index
    %43 = vector.load %arg4[%c0_10, %c0_11] : memref<24x16xf32, #tpu.memory_space<vmem>>, vector<24x16xf32>
    %cst_12 = arith.constant dense<0.000000e+00> : vector<24x16xf32>
    %44 = tpu.matmul %42, %43, %cst_12 {dimension_numbers = #tpu.dot_dimension_numbers<[1], [0], [0], [1], [0, 0, 1, 1], [], []>} : vector<24x24xf32>, vector<24x16xf32>, vector<24x16xf32> -> vector<24x16xf32>
    %c0_13 = arith.constant 0 : index
    %c0_14 = arith.constant 0 : index
    %45 = vector.load %arg5[%c0_13, %c0_14] : memref<1x16xf32, #tpu.memory_space<vmem>>, vector<1x16xf32>
    %46 = vector.broadcast %45 : vector<1x16xf32> to vector<24x16xf32>
    %47 = arith.addf %44, %46 : vector<24x16xf32>
    %48 = vector.shape_cast %47 : vector<24x16xf32> to vector<3x8x16xf32>
    %cst_15 = arith.constant 0.000000e+00 : f32
    %49 = vector.broadcast %cst_15 : f32 to vector<1x8x16xf32>
    %50 = tpu.concatenate %48, %49 in 0 : vector<3x8x16xf32>, vector<1x8x16xf32> -> vector<4x8x16xf32>
    %51 = vector.shape_cast %50 : vector<4x8x16xf32> to vector<2x2x8x16xf32>
    %52 = vector.extract_strided_slice %51 {offsets = [0, 0, 0, 0], sizes = [1, 1, 8, 16], strides = [1, 1, 1, 1]} : vector<2x2x8x16xf32> to vector<1x1x8x16xf32>
    %53 = vector.shape_cast %52 : vector<1x1x8x16xf32> to vector<1x8x16xf32>
    %54 = vector.extract_strided_slice %51 {offsets = [0, 1, 0, 0], sizes = [1, 1, 8, 16], strides = [1, 1, 1, 1]} : vector<2x2x8x16xf32> to vector<1x1x8x16xf32>
    %55 = vector.shape_cast %54 : vector<1x1x8x16xf32> to vector<1x8x16xf32>
    %56 = vector.extract_strided_slice %51 {offsets = [1, 0, 0, 0], sizes = [1, 1, 8, 16], strides = [1, 1, 1, 1]} : vector<2x2x8x16xf32> to vector<1x1x8x16xf32>
    %57 = vector.shape_cast %56 : vector<1x1x8x16xf32> to vector<1x8x16xf32>
    %58 = arith.maximumf %53, %55 : vector<1x8x16xf32>
    %59 = arith.maximumf %58, %57 : vector<1x8x16xf32>
    %cst_16 = arith.constant 0.000000e+00 : f32
    %60 = vector.broadcast %cst_16 : f32 to vector<1x8x16xf32>
    %61 = arith.cmpf oge, %59, %60 : vector<1x8x16xf32>
    %cst_17 = arith.constant 0.00999999977 : f32
    %62 = vector.broadcast %cst_17 : f32 to vector<1x8x16xf32>
    %63 = arith.mulf %62, %59 : vector<1x8x16xf32>
    %64 = arith.select %61, %59, %63 : vector<1x8x16xi1>, vector<1x8x16xf32>
    %65 = vector.shape_cast %64 : vector<1x8x16xf32> to vector<8x16xf32>
    %c0_18 = arith.constant 0 : index
    %c0_19 = arith.constant 0 : index
    %66 = vector.load %arg6[%c0_18, %c0_19] : memref<16x1024xf32, #tpu.memory_space<vmem>>, vector<16x1024xf32>
    %cst_20 = arith.constant dense<0.000000e+00> : vector<8x1024xf32>
    %67 = tpu.matmul %65, %66, %cst_20 {dimension_numbers = #tpu.dot_dimension_numbers<[1], [0], [0], [1], [0, 0, 1, 1], [], []>} : vector<8x16xf32>, vector<16x1024xf32>, vector<8x1024xf32> -> vector<8x1024xf32>
    %c0_21 = arith.constant 0 : index
    %c0_22 = arith.constant 0 : index
    %68 = vector.load %arg7[%c0_21, %c0_22] : memref<1x1024xf32, #tpu.memory_space<vmem>>, vector<1x1024xf32>
    %69 = vector.broadcast %68 : vector<1x1024xf32> to vector<8x1024xf32>
    %70 = arith.addf %67, %69 : vector<8x1024xf32>
    %cst_23 = arith.constant 0.000000e+00 : f32
    %71 = vector.broadcast %cst_23 : f32 to vector<8x1024xf32>
    %72 = arith.cmpf oge, %70, %71 : vector<8x1024xf32>
    %cst_24 = arith.constant 0.00999999977 : f32
    %73 = vector.broadcast %cst_24 : f32 to vector<8x1024xf32>
    %74 = arith.mulf %73, %70 : vector<8x1024xf32>
    %75 = arith.select %72, %70, %74 : vector<8x1024xi1>, vector<8x1024xf32>
    %c0_25 = arith.constant 0 : index
    %c0_26 = arith.constant 0 : index
    %76 = vector.load %arg8[%c0_25, %c0_26] : memref<1024x5xf32, #tpu.memory_space<vmem>>, vector<1024x5xf32>
    %cst_27 = arith.constant dense<0.000000e+00> : vector<8x5xf32>
    %77 = tpu.matmul %75, %76, %cst_27 {dimension_numbers = #tpu.dot_dimension_numbers<[1], [0], [0], [1], [0, 0, 1, 1], [], []>} : vector<8x1024xf32>, vector<1024x5xf32>, vector<8x5xf32> -> vector<8x5xf32>
    %c0_28 = arith.constant 0 : index
    %c0_29 = arith.constant 0 : index
    %78 = vector.load %arg9[%c0_28, %c0_29] : memref<1x5xf32, #tpu.memory_space<vmem>>, vector<1x5xf32>
    %79 = vector.broadcast %78 : vector<1x5xf32> to vector<8x5xf32>
    %80 = arith.addf %77, %79 : vector<8x5xf32>
    %c0_30 = arith.constant 0 : index
    %c0_31 = arith.constant 0 : index
    %81 = vector.load %arg10[%c0_30, %c0_31] : memref<8x5xf32, #tpu.memory_space<vmem>>, vector<8x5xf32>
    tpu.vector_store %arg10[%c0_30, %c0_31], %80 {strides = array<i32>} : memref<8x5xf32, #tpu.memory_space<vmem>>, vector<8x5xf32>,
    return
  }
  func.func @transform_0(%arg0: i32) -> (i32, i32, i32) {
    %c0_i32 = arith.constant 0 : i32
    %c0_i32_0 = arith.constant 0 : i32
    %c0_i32_1 = arith.constant 0 : i32
    return %c0_i32, %arg0, %c0_i32_0 : i32, i32, i32
  }
  func.func @transform_1(%arg0: i32) -> (i32, i32) {
    %c0_i32 = arith.constant 0 : i32
    %c0_i32_0 = arith.constant 0 : i32
    %c0_i32_1 = arith.constant 0 : i32
    return %c0_i32, %c0_i32_0 : i32, i32
  }
  func.func @transform_2(%arg0: i32) -> (i32, i32) {
    %c0_i32 = arith.constant 0 : i32
    %c0_i32_0 = arith.constant 0 : i32
    %c0_i32_1 = arith.constant 0 : i32
    return %c0_i32, %c0_i32_0 : i32, i32
  }
  func.func @transform_3(%arg0: i32) -> (i32, i32) {
    %c0_i32 = arith.constant 0 : i32
    %c0_i32_0 = arith.constant 0 : i32
    %c0_i32_1 = arith.constant 0 : i32
    return %c0_i32, %c0_i32_0 : i32, i32
  }
  func.func @transform_4(%arg0: i32) -> (i32, i32) {
    %c0_i32 = arith.constant 0 : i32
    %c0_i32_0 = arith.constant 0 : i32
    %c0_i32_1 = arith.constant 0 : i32
    return %c0_i32, %c0_i32_0 : i32, i32
  }
  func.func @transform_5(%arg0: i32) -> (i32, i32) {
    %c0_i32 = arith.constant 0 : i32
    %c0_i32_0 = arith.constant 0 : i32
    %c0_i32_1 = arith.constant 0 : i32
    return %c0_i32, %c0_i32_0 : i32, i32
  }
  func.func @transform_6(%arg0: i32) -> (i32, i32) {
    %c0_i32 = arith.constant 0 : i32
    %c0_i32_0 = arith.constant 0 : i32
    %c0_i32_1 = arith.constant 0 : i32
    return %c0_i32, %c0_i32_0 : i32, i32
  }
  func.func @transform_7(%arg0: i32) -> (i32, i32) {
    %c0_i32 = arith.constant 0 : i32
    %c0_i32_0 = arith.constant 0 : i32
    %c0_i32_1 = arith.constant 0 : i32
    return %c0_i32, %c0_i32_0 : i32, i32
  }
  func.func @transform_8(%arg0: i32) -> (i32, i32) {
    %c0_i32 = arith.constant 0 : i32
    %c0_i32_0 = arith.constant 0 : i32
    %c0_i32_1 = arith.constant 0 : i32
    return %c0_i32, %c0_i32_0 : i32, i32
  }
  func.func @transform_9(%arg0: i32) -> (i32, i32) {
    %c0_i32 = arith.constant 0 : i32
    %c0_i32_0 = arith.constant 0 : i32
    return %arg0, %c0_i32 : i32, i32
  }
}

</mosaic_0001>

<bundles_post_ra>
// kernel: cnnnet_forward.1
= control target key start
LH: loop header
LB: loop body
LE: loop exit
PB: predicated region body
PF: predicated region fallthrough
CT: control target
= control target key end

     0   :  { %v1786_v2 = vmov 0.0|0.0   ;;  %s1787_s13 = smov 4   ;;  %vm1788_vm0 = vmmov 0   ;;  %v1789_v5 = vmov 0.0   ;;  %s1790_s18 = smov 8   ;;  %vm270_vm1 = vcmask 1043456   ;;  %s2639_s0 = inlined_call_operand.vmem [shape: f32[32,8,4], index: 0, kind: input, shape index: {}]   ;;  %s2640_s1 = inlined_call_operand.vmem [shape: f32[12,8], index: 1, kind: input, shape index: {}]   ;;  %s2641_s2 = inlined_call_operand.vmem [shape: f32[1,8], index: 2, kind: input, shape index: {}]   ;;  %s2642_s3 = inlined_call_operand.vmem [shape: f32[24,16], index: 3, kind: input, shape index: {}]   ;;  %s2643_s5 = inlined_call_operand.vmem [shape: f32[16,1024], index: 5, kind: input, shape index: {}]   ;;  %s2644_s7 = inlined_call_operand.vmem [shape: f32[1024,5], index: 7, kind: input, shape index: {}]   ;;  %s2645_s4 = inlined_call_operand.vmem [shape: f32[1,16], index: 4, kind: input, shape index: {}]   ;;  %s2646_s6 = inlined_call_operand.vmem [shape: f32[1,1024], index: 6, kind: input, shape index: {}]   ;;  %s2647_s8 = inlined_call_operand.vmem [shape: f32[1,5], index: 8, kind: input, shape index: {}]   ;;  %s2648_s9 = inlined_call_operand.vmem [shape: f32[8,5], index: 9, kind: output, shape index: {}]  }
   0x1   :  { %v33_v0 = vld [vmem:[%s2639_s0 + $0x8] sm:$0xff]  ;;  %v35_v1 = vld [vmem:[%s2639_s0 + $0x18] sm:$0xff]  ;;  %1628 = vmatprep.subr.bf16.mxu0 %v1786_v2  ;;  %1632 = vmatprep.subr.bf16.mxu1 %v1786_v2  ;;  %v1854_v3 = vld [vmem:[%s2639_s0 + $0x10] sm:$0xff]  ;;  %vm1791_vm2 = vmmov 1   ;;  %vm183_vm4 = vcmask 31744   ;;  %vm199_vm5 = vcmask 64512  }
   0x2   :  { %78 = vrot.lane.b32.xlu0 %v33_v0, %s1787_s13  ;;  %80 = vrot.lane.b32.xlu1 %v35_v1, %s1787_s13  ;;  %v1859_v4 = vld [vmem:[%s2639_s0 + $0x20] sm:$0xff]  ;;  %v37_v6 = vld [vmem:[%s2639_s0 + $0x28] sm:$0xff]  ;;  %vm1630_vm3 = vmpackc.low %vm270_vm1, %vm1791_vm2  ;;  %vm224_vm6 = vcmask 97280   ;;  %vm476_vm14 = vcmask 130048   ;;  %vm490_vm15 = vcmask 195584  }
   0x3   :  { %1568 = vmatprep.mubr.msk.f32.mxu0 %vm1788_vm0, %v1789_v5  ;;  %1619 = vmatprep.mubr.msk.f32.mxu1 %vm1788_vm0, %v1789_v5  ;;  %v1875_v7 = vld [vmem:[%s2639_s0 + $0x30] sm:$0xff]  ;;  %v39_v8 = vld [vmem:[%s2639_s0 + $0x38] sm:$0xff]  ;;  %v1886_v9 = vld [vmem:[%s2639_s0 + $0x40] sm:$0xff] }
   0x4   :  { %v215_v10 = vld [vmem:[%s2640_s1] sm:$0xff]  ;;  %v216_v11 = vld [vmem:[%s2640_s1 + $0x8] sm:$0xf]  ;;  %v1903_v14 = vld [vmem:[%s2639_s0 + $0x50] sm:$0xff] }
   0x5   :  { %v1629_v12 = vpack.c.bf16 %v216_v11, %v215_v10  ;;  %v41_v13 = vld [vmem:[%s2639_s0 + $0x48] sm:$0xff]  ;;  %v43_v15 = vld [vmem:[%s2639_s0 + $0x58] sm:$0xff]  ;;  %v1914_v16 = vld [vmem:[%s2639_s0 + $0x60] sm:$0xff] }
   0x6   :  { %138 = vrot.lane.b32.xlu0 %v1854_v3, %s1790_s18  ;;  %140 = vrot.lane.b32.xlu1 %v1859_v4, %s1790_s18  ;;  %v45_v17 = vld [vmem:[%s2639_s0 + $0x68] sm:$0xff]  ;;  %v1925_v18 = vld [vmem:[%s2639_s0 + $0x70] sm:$0xff] }
   0x7   :  { %1631 = vmatpush3.bf16.msk.msra.mxu0 %vm1630_vm3, %v1629_v12  ;;  %v47_v19 = vld [vmem:[%s2639_s0 + $0x78] sm:$0xff]  ;;  %v1936_v20 = vld [vmem:[%s2639_s0 + $0x80] sm:$0xff]  ;;  %v49_v21 = vld [vmem:[%s2639_s0 + $0x88] sm:$0xff] }
   0x8   :  { %v1947_v22 = vld [vmem:[%s2639_s0 + $0x90] sm:$0xff]  ;;  %v51_v23 = vld [vmem:[%s2639_s0 + $0x98] sm:$0xff]  ;;  %v1958_v24 = vld [vmem:[%s2639_s0 + $0xa0] sm:$0xff] }
   0x9   :  { %v53_v25 = vld [vmem:[%s2639_s0 + $0xa8] sm:$0xff]  ;;  %v1969_v26 = vld [vmem:[%s2639_s0 + $0xb0] sm:$0xff]  ;;  %v55_v27 = vld [vmem:[%s2639_s0 + $0xb8] sm:$0xff] }
   0xa   :  { %82 = vrot.lane.b32.xlu0 %v37_v6, %s1787_s13  ;;  %142 = vrot.lane.b32.xlu1 %v1875_v7, %s1790_s18  ;;  %v1980_v28 = vld [vmem:[%s2639_s0 + $0xc0] sm:$0xff]  ;;  %v57_v29 = vld [vmem:[%s2639_s0 + $0xc8] sm:$0xff] }
   0xb   :  { %v1991_v30 = vld [vmem:[%s2639_s0 + $0xd0] sm:$0xff]  ;;  %v59_v31 = vld [vmem:[%s2639_s0 + $0xd8] sm:$0xff]  ;;  %v2002_v32 = vld [vmem:[%s2639_s0 + $0xe0] sm:$0xff] }
   0xc   :  { %v61_v33 = vld [vmem:[%s2639_s0 + $0xe8] sm:$0xff]  ;;  %v62_v34 = vld [vmem:[%s2639_s0 + $0xf0] sm:$0xff]  ;;  %v32_v37 = vld [vmem:[%s2639_s0] sm:$0xff] }
   0xe   :  { %84 = vrot.lane.b32.xlu0 %v39_v8, %s1787_s13  ;;  %144 = vrot.lane.b32.xlu1 %v1886_v9, %s1790_s18 }
  0x12   :  { %86 = vrot.lane.b32.xlu0 %v41_v13, %s1787_s13  ;;  %146 = vrot.lane.b32.xlu1 %v1903_v14, %s1790_s18 }
  0x16   :  { %88 = vrot.lane.b32.xlu0 %v43_v15, %s1787_s13  ;;  %148 = vrot.lane.b32.xlu1 %v1914_v16, %s1790_s18 }
  0x1a   :  { %90 = vrot.lane.b32.xlu0 %v45_v17, %s1787_s13  ;;  %150 = vrot.lane.b32.xlu1 %v1925_v18, %s1790_s18 }
  0x1e   :  { %92 = vrot.lane.b32.xlu0 %v47_v19, %s1787_s13  ;;  %152 = vrot.lane.b32.xlu1 %v1936_v20, %s1790_s18 }
  0x22   :  { %94 = vrot.lane.b32.xlu0 %v49_v21, %s1787_s13  ;;  %154 = vrot.lane.b32.xlu1 %v1947_v22, %s1790_s18 }
  0x26   :  { %96 = vrot.lane.b32.xlu0 %v51_v23, %s1787_s13  ;;  %156 = vrot.lane.b32.xlu1 %v1958_v24, %s1790_s18 }
  0x2a   :  { %98 = vrot.lane.b32.xlu0 %v53_v25, %s1787_s13  ;;  %158 = vrot.lane.b32.xlu1 %v1969_v26, %s1790_s18 }
  0x2e   :  { %100 = vrot.lane.b32.xlu0 %v55_v27, %s1787_s13  ;;  %160 = vrot.lane.b32.xlu1 %v1980_v28, %s1790_s18 }
  0x32   :  { %102 = vrot.lane.b32.xlu0 %v57_v29, %s1787_s13  ;;  %162 = vrot.lane.b32.xlu1 %v1991_v30, %s1790_s18 }
  0x36   :  { %104 = vrot.lane.b32.xlu0 %v59_v31, %s1787_s13  ;;  %164 = vrot.lane.b32.xlu1 %v2002_v32, %s1790_s18 }
  0x3a   :  { %106 = vrot.lane.b32.xlu0 %v61_v33, %s1787_s13  ;;  %166 = vrot.lane.b32.xlu1 %v62_v34, %s1790_s18 }
  0x74   :  { %v79_v35 = vpop.permute.xlu0 %78  ;;  %v81_v36 = vpop.permute.xlu1 %80 }
  0x75   :  { %v184_v38 = vsel %vm183_vm4, %v32_v37, %v79_v35  ;;  %v185_v42 = vsel %vm183_vm4, %v1854_v3, %v81_v36 }
  0x78   :  { %v139_v39 = vpop.permute.xlu0 %138  ;;  %v141_v40 = vpop.permute.xlu1 %140 }
  0x79   :  { %v200_v41 = vsel %vm199_vm5, %v184_v38, %v139_v39  ;;  %v201_v45 = vsel %vm199_vm5, %v185_v42, %v141_v40 }
  0x7a   :  { %1569 = vmatmul.mubr.msk.f32.vlgmr.msra.gmra.mrb[0].mxu0 %vm224_vm6, %v200_v41 }
  0x7b   :  { %1571 = vmatprep.mubr.msk.f32.mxu0 %vm1788_vm0, %v1789_v5 }
  0x7c   :  { %v83_v43 = vpop.permute.xlu0 %82  ;;  %v143_v44 = vpop.permute.xlu1 %142 }
  0x7d   :  { %v186_v46 = vsel %vm183_vm4, %v1859_v4, %v83_v43 }
  0x7e   :  { %1572 = vmatmul.mubr.msk.f32.gmra.mrb[2].mxu0 %vm224_vm6, %v201_v45  ;;  %v202_v47 = vsel %vm199_vm5, %v186_v46, %v143_v44  ;;  %v480_v46 = vld [vmem:[%s2642_s3] sm:$0xff] }
  0x7f   :  { %1574 = vmatprep.mubr.msk.f32.mxu0 %vm1788_vm0, %v1789_v5 }
  0x80   :  { %v85_v48 = vpop.permute.xlu0 %84  ;;  %v145_v49 = vpop.permute.xlu1 %144 }
  0x81   :  { %v187_v50 = vsel %vm183_vm4, %v1875_v7, %v85_v48 }
  0x82   :  { %1575 = vmatmul.mubr.msk.f32.gmra.mrb[4].mxu0 %vm224_vm6, %v202_v47  ;;  %v203_v51 = vsel %vm199_vm5, %v187_v50, %v145_v49  ;;  %v481_v47 = vld [vmem:[%s2642_s3 + $0x8] sm:$0xff] }
  0x83   :  { %1577 = vmatprep.mubr.msk.f32.mxu0 %vm1788_vm0, %v1789_v5  ;;  %v1633_v50 = vpack.c.bf16 %v481_v47, %v480_v46 }
  0x84   :  { %v87_v52 = vpop.permute.xlu0 %86  ;;  %v147_v53 = vpop.permute.xlu1 %146 }
  0x85   :  { %v188_v54 = vsel %vm183_vm4, %v1886_v9, %v87_v52  ;;  %1634 = vmatpush3.bf16.msra.mxu1 %v1633_v50 }
  0x86   :  { %1578 = vmatmul.mubr.msk.f32.gmra.mrb[6].mxu0 %vm224_vm6, %v203_v51  ;;  %v204_v55 = vsel %vm199_vm5, %v188_v54, %v147_v53  ;;  %1617 = vmatprep.subr.mxu1 %v1789_v5 }
  0x87   :  { %1580 = vmatprep.mubr.msk.f32.mxu0 %vm1788_vm0, %v1789_v5 }
  0x88   :  { %v89_v56 = vpop.permute.xlu0 %88  ;;  %v149_v57 = vpop.permute.xlu1 %148 }
  0x89   :  { %v189_v58 = vsel %vm183_vm4, %v1903_v14, %v89_v56 }
  0x8a   :  { %1581 = vmatmul.mubr.msk.f32.gmra.mrb[8].mxu0 %vm224_vm6, %v204_v55  ;;  %v205_v59 = vsel %vm199_vm5, %v189_v58, %v149_v57  ;;  %v482_v55 = vld [vmem:[%s2642_s3 + $0x10] sm:$0xff]  ;;  %s1792_s3 = smov 16  }
  0x8b   :  { %1583 = vmatprep.mubr.msk.f32.mxu0 %vm1788_vm0, %v1789_v5  ;;  %1618 = vmatpush3.msra.mxu1 %v482_v55 }
  0x8c   :  { %v91_v60 = vpop.permute.xlu0 %90  ;;  %v151_v61 = vpop.permute.xlu1 %150 }
  0x8d   :  { %v190_v62 = vsel %vm183_vm4, %v1914_v16, %v91_v60 }
  0x8e   :  { %1584 = vmatmul.mubr.msk.f32.gmra.mrb[10].mxu0 %vm224_vm6, %v205_v59  ;;  %v206_v63 = vsel %vm199_vm5, %v190_v62, %v151_v61 }
  0x8f   :  { %1586 = vmatprep.mubr.msk.f32.mxu0 %vm1788_vm0, %v1789_v5 }
  0x90   :  { %v93_v0 = vpop.permute.xlu0 %92  ;;  %v153_v1 = vpop.permute.xlu1 %152 }
  0x91   :  { %v191_v2 = vsel %vm183_vm4, %v1925_v18, %v93_v0 }
  0x92   :  { %1587 = vmatmul.mubr.msk.f32.gmra.mrb[12].mxu0 %vm224_vm6, %v206_v63  ;;  %v207_v3 = vsel %vm199_vm5, %v191_v2, %v153_v1 }
  0x93   :  { %1589 = vmatprep.mubr.msk.f32.mxu0 %vm1788_vm0, %v1789_v5 }
  0x94   :  { %v95_v4 = vpop.permute.xlu0 %94  ;;  %v155_v6 = vpop.permute.xlu1 %154 }
  0x95   :  { %v192_v7 = vsel %vm183_vm4, %v1936_v20, %v95_v4 }
  0x96   :  { %1590 = vmatmul.mubr.msk.f32.gmra.mrb[14].mxu0 %vm224_vm6, %v207_v3  ;;  %v208_v8 = vsel %vm199_vm5, %v192_v7, %v155_v6 }
  0x97   :  { %1592 = vmatprep.mubr.msk.f32.mxu0 %vm1788_vm0, %v1789_v5 }
  0x98   :  { %v97_v9 = vpop.permute.xlu0 %96  ;;  %v157_v10 = vpop.permute.xlu1 %156 }
  0x99   :  { %v193_v11 = vsel %vm183_vm4, %v1947_v22, %v97_v9 }
  0x9a   :  { %1593 = vmatmul.mubr.msk.f32.gmra.mrb[16].mxu0 %vm224_vm6, %v208_v8  ;;  %v209_v12 = vsel %vm199_vm5, %v193_v11, %v157_v10 }
  0x9b   :  { %1595 = vmatprep.mubr.msk.f32.mxu0 %vm1788_vm0, %v1789_v5 }
  0x9c   :  { %v99_v13 = vpop.permute.xlu0 %98  ;;  %v159_v14 = vpop.permute.xlu1 %158 }
  0x9d   :  { %v194_v15 = vsel %vm183_vm4, %v1958_v24, %v99_v13 }
  0x9e   :  { %1596 = vmatmul.mubr.msk.f32.gmra.mrb[18].mxu0 %vm224_vm6, %v209_v12  ;;  %v210_v16 = vsel %vm199_vm5, %v194_v15, %v159_v14 }
  0x9f   :  { %1598 = vmatprep.mubr.msk.f32.mxu0 %vm1788_vm0, %v1789_v5 }
  0xa0   :  { %v101_v17 = vpop.permute.xlu0 %100  ;;  %v161_v18 = vpop.permute.xlu1 %160 }
  0xa1   :  { %v195_v19 = vsel %vm183_vm4, %v1969_v26, %v101_v17 }
  0xa2   :  { %1599 = vmatmul.mubr.msk.f32.gmra.mrb[20].mxu0 %vm224_vm6, %v210_v16  ;;  %v211_v20 = vsel %vm199_vm5, %v195_v19, %v161_v18 }
  0xa3   :  { %1601 = vmatprep.mubr.msk.f32.mxu0 %vm1788_vm0, %v1789_v5 }
  0xa4   :  { %v103_v21 = vpop.permute.xlu0 %102  ;;  %v163_v22 = vpop.permute.xlu1 %162 }
  0xa5   :  { %v196_v23 = vsel %vm183_vm4, %v1980_v28, %v103_v21 }
  0xa6   :  { %1602 = vmatmul.mubr.msk.f32.gmra.mrb[22].mxu0 %vm224_vm6, %v211_v20  ;;  %v212_v24 = vsel %vm199_vm5, %v196_v23, %v163_v22 }
  0xa7   :  { %1604 = vmatprep.mubr.msk.f32.mxu0 %vm1788_vm0, %v1789_v5 }
  0xa8   :  { %v105_v25 = vpop.permute.xlu0 %104  ;;  %v165_v26 = vpop.permute.xlu1 %164 }
  0xa9   :  { %v197_v27 = vsel %vm183_vm4, %v1991_v30, %v105_v25  ;;  %v2108_v30 = vld [vmem:[%s2641_s2] ss:$0 sm:$0xff] }
  0xaa   :  { %1605 = vmatmul.mubr.msk.f32.gmra.mrb[24].mxu0 %vm224_vm6, %v212_v24  ;;  %v213_v29 = vsel %vm199_vm5, %v197_v27, %v165_v26 }
  0xab   :  { %1607 = vmatprep.mubr.msk.f32.mxu0 %vm1788_vm0, %v1789_v5 }
  0xac   :  { %v107_v28 = vpop.permute.xlu0 %106  ;;  %v167_v31 = vpop.permute.xlu1 %166 }
  0xad   :  { %v198_v33 = vsel %vm183_vm4, %v2002_v32, %v107_v28 }
  0xae   :  { %1608 = vmatmul.mubr.msk.f32.gmra.mrb[26].mxu0 %vm224_vm6, %v213_v29  ;;  %v214_v34 = vsel %vm199_vm5, %v198_v33, %v167_v31 }
  0xaf   :  { %1610 = vmatprep.mubr.msk.f32.mxu0 %vm1788_vm0, %v1789_v5 }
  0xb2   :  { %1611 = vmatmul.mubr.msk.f32.gmra.mrb[28].mxu0 %vm224_vm6, %v214_v34 }
 0x14d   :  { %v340_v35 = vpop.f32.mrb[0].mxu0 }
 0x14e   :  { %v341_v36 = vadd.f32 %v2108_v30, %v340_v35  ;;  %v1570_v37 = vpop.f32.mrb[1].mxu0 }
 0x151   :  { %v345_v38 = vpop.f32.mrb[2].mxu0 }
 0x152   :  { %v346_v32 = vadd.f32 %v2108_v30, %v345_v38  ;;  %v1573_v39 = vpop.f32.mrb[3].mxu0 }
 0x154   :  { %v414_v40 = vmax.f32 %v341_v36, %v346_v32 }
 0x155   :  { %v350_v41 = vpop.f32.mrb[4].mxu0 }
 0x156   :  { %v351_v42 = vadd.f32 %v2108_v30, %v350_v41  ;;  %v1576_v43 = vpop.f32.mrb[5].mxu0 }
 0x158   :  { %v2113_v44 = vmax.f32 %v414_v40, %v351_v42 }
 0x159   :  { %v355_v45 = vpop.f32.mrb[6].mxu0 }
 0x15a   :  { %v356_v48 = vadd.f32 %v2108_v30, %v355_v45  ;;  %v1579_v49 = vpop.f32.mrb[7].mxu0  ;;  %vm428_vm13 = vcmp.ge.f32.partialorder %v2113_v44, 0.0 }
 0x15c   :  { %v415_v51 = vmax.f32 %v351_v42, %v356_v48  ;;  %v435_v48 = vmul.f32 0.01, %v2113_v44 }
 0x15d   :  { %v360_v52 = vpop.f32.mrb[8].mxu0 }
 0x15e   :  { %v361_v53 = vadd.f32 %v2108_v30, %v360_v52  ;;  %v1582_v54 = vpop.f32.mrb[9].mxu0  ;;  %v442_v50 = vsel %vm428_vm13, %v2113_v44, %v435_v48  ;;  %v999_v48 = vld [vmem:[%s2644_s7 + $0x168] sm:$0xff] }
 0x160   :  { %v422_v56 = vmax.f32 %v415_v51, %v361_v53 }
 0x161   :  { %v365_v57 = vpop.f32.mrb[10].mxu0 }
 0x162   :  { %v366_v58 = vadd.f32 %v2108_v30, %v365_v57  ;;  %v1585_v59 = vpop.f32.mrb[11].mxu0  ;;  %vm429_vm7 = vcmp.ge.f32.partialorder %v422_v56, 0.0  ;;  %v436_v60 = vmul.f32 0.01, %v422_v56 }
 0x164   :  { %v416_v61 = vmax.f32 %v361_v53, %v366_v58  ;;  %v443_v62 = vsel %vm429_vm7, %v422_v56, %v436_v60  ;;  %v586_v60 = vld [vmem:[%s2643_s5 + $0x8] sm:$0xff] }
 0x165   :  { %452 = vrot.lane.b32.xlu0 %v443_v62, %s1790_s18  ;;  %v370_v63 = vpop.f32.mrb[12].mxu0  ;;  %v585_v62 = vld [vmem:[%s2643_s5] sm:$0xff] }
 0x166   :  { %v371_v0 = vadd.f32 %v2108_v30, %v370_v63  ;;  %v1588_v1 = vpop.f32.mrb[13].mxu0 }
 0x168   :  { %v423_v2 = vmax.f32 %v416_v61, %v371_v0  ;;  %v594_v61 = vld [vmem:[%s2643_s5 + $0x48] sm:$0xff] }
 0x169   :  { %v375_v3 = vpop.f32.mrb[14].mxu0  ;;  %v1635_v63 = vpack.c.bf16 %v594_v61, %v586_v60  ;;  %v595_v60 = vld [vmem:[%s2643_s5 + $0x50] sm:$0xff] }
 0x16a   :  { %v376_v4 = vadd.f32 %v2108_v30, %v375_v3  ;;  %v1591_v6 = vpop.f32.mrb[15].mxu0  ;;  %vm430_vm8 = vcmp.ge.f32.partialorder %v423_v2, 0.0  ;;  %v437_v7 = vmul.f32 0.01, %v423_v2  ;;  %v596_v3 = vld [vmem:[%s2643_s5 + $0x58] sm:$0xff] }
 0x16b   :  { %1636 = vmatprep.subr.bf16.mxu1 %v1635_v63  ;;  %v1002_v6 = vld [vmem:[%s2644_s7 + $0x180] sm:$0xff]  ;;  %v598_v63 = vld [vmem:[%s2643_s5 + $0x68] sm:$0xff] }
 0x16c   :  { %v417_v8 = vmax.f32 %v371_v0, %v376_v4  ;;  %v444_v9 = vsel %vm430_vm8, %v423_v2, %v437_v7  ;;  %v593_v0 = vld [vmem:[%s2643_s5 + $0x40] sm:$0xff]  ;;  %v588_v2 = vld [vmem:[%s2643_s5 + $0x18] sm:$0xff]  ;;  %v1003_v7 = vld [vmem:[%s2644_s7 + $0x188] sm:$0xff] }
 0x16d   :  { %464 = vrot.lane.b32.xlu1 %v444_v9, %s1792_s3  ;;  %v380_v10 = vpop.f32.mrb[16].mxu0  ;;  %v1637_v1 = vpack.c.bf16 %v593_v0, %v585_v62  ;;  %v1639_v4 = vpack.c.bf16 %v596_v3, %v588_v2  ;;  %v590_v62 = vld [vmem:[%s2643_s5 + $0x28] sm:$0xff]  ;;  %v589_v3 = vld [vmem:[%s2643_s5 + $0x20] sm:$0xff] }
 0x16e   :  { %v381_v11 = vadd.f32 %v2108_v30, %v380_v10  ;;  %v1594_v12 = vpop.f32.mrb[17].mxu0  ;;  %v987_v10 = vld [vmem:[%s2644_s7 + $0x108] sm:$0xff]  ;;  %v1643_v2 = vpack.c.bf16 %v598_v63, %v590_v62  ;;  %v1017_v62 = vld [vmem:[%s2644_s7 + $0x1f8] sm:$0xff]  ;;  %v1034_v63 = vld [vmem:[%s2644_s7 + $0x280] sm:$0xff] }
 0x16f   :  { %v1005_v12 = vld [vmem:[%s2644_s7 + $0x198] sm:$0xff] }
 0x170   :  { %v424_v13 = vmax.f32 %v417_v8, %v381_v11  ;;  %v986_v8 = vld [vmem:[%s2644_s7 + $0x100] sm:$0xff] }
 0x171   :  { %v385_v14 = vpop.f32.mrb[18].mxu0 }
 0x172   :  { %v386_v15 = vadd.f32 %v2108_v30, %v385_v14  ;;  %v1597_v16 = vpop.f32.mrb[19].mxu0  ;;  %vm431_vm9 = vcmp.ge.f32.partialorder %v424_v13, 0.0  ;;  %v438_v17 = vmul.f32 0.01, %v424_v13 }
 0x173   :  { %v989_v16 = vld [vmem:[%s2644_s7 + $0x118] sm:$0xff] }
 0x174   :  { %v418_v18 = vmax.f32 %v381_v11, %v386_v15  ;;  %v445_v19 = vsel %vm431_vm9, %v424_v13, %v438_v17  ;;  %v1004_v11 = vld [vmem:[%s2644_s7 + $0x190] sm:$0xff]  ;;  %v1685_v13 = vpack.c.bf16 %v987_v10, %v986_v8  ;;  %v1006_v17 = vld [vmem:[%s2644_s7 + $0x1a0] sm:$0xff]  ;;  %v600_v8 = vld [vmem:[%s2643_s5 + $0x78] sm:$0xff]  ;;  %vm1369_vm9 = vcmask 39936  }
 0x175   :  { %454 = vrot.lane.b32.xlu0 %v445_v19, %s1790_s18  ;;  %v390_v20 = vpop.f32.mrb[20].mxu0  ;;  %v1687_v14 = vpack.c.bf16 %v1005_v12, %v1004_v11  ;;  %v988_v15 = vld [vmem:[%s2644_s7 + $0x110] sm:$0xff] }
 0x176   :  { %v391_v21 = vadd.f32 %v2108_v30, %v390_v20  ;;  %v1600_v22 = vpop.f32.mrb[21].mxu0  ;;  %v1689_v19 = vpack.c.bf16 %v989_v16, %v988_v15  ;;  %v591_v11 = vld [vmem:[%s2643_s5 + $0x30] sm:$0xff] }
 0x177   :  { %v991_v22 = vld [vmem:[%s2644_s7 + $0x128] sm:$0xff]  ;;  %v599_v12 = vld [vmem:[%s2643_s5 + $0x70] sm:$0xff] }
 0x178   :  { %v425_v23 = vmax.f32 %v418_v18, %v391_v21  ;;  %v1007_v18 = vld [vmem:[%s2644_s7 + $0x1a8] sm:$0xff]  ;;  %v1649_v15 = vpack.c.bf16 %v599_v12, %v591_v11 }
 0x179   :  { %v395_v24 = vpop.f32.mrb[22].mxu0  ;;  %v1691_v20 = vpack.c.bf16 %v1007_v18, %v1006_v17  ;;  %v954_v17 = vld [vmem:[%s2644_s7] sm:$0xff]  ;;  %v955_v18 = vld [vmem:[%s2644_s7 + $0x8] sm:$0xff] }
 0x17a   :  { %v396_v25 = vadd.f32 %v2108_v30, %v395_v24  ;;  %v1603_v26 = vpop.f32.mrb[23].mxu0  ;;  %vm432_vm10 = vcmp.ge.f32.partialorder %v425_v23, 0.0  ;;  %v439_v27 = vmul.f32 0.01, %v425_v23  ;;  %v1009_v24 = vld [vmem:[%s2644_s7 + $0x1b8] sm:$0xff] }
 0x17c   :  { %v419_v29 = vmax.f32 %v391_v21, %v396_v25  ;;  %v446_v28 = vsel %vm432_vm10, %v425_v23, %v439_v27  ;;  %v990_v21 = vld [vmem:[%s2644_s7 + $0x120] sm:$0xff]  ;;  %v1008_v23 = vld [vmem:[%s2644_s7 + $0x1b0] sm:$0xff] }
 0x17d   :  { %466 = vrot.lane.b32.xlu1 %v446_v28, %s1792_s3  ;;  %v400_v31 = vpop.f32.mrb[24].mxu0  ;;  %v1693_v25 = vpack.c.bf16 %v991_v22, %v990_v21  ;;  %v1695_v26 = vpack.c.bf16 %v1009_v24, %v1008_v23  ;;  %v992_v27 = vld [vmem:[%s2644_s7 + $0x130] sm:$0xff]  ;;  %v1653_v21 = vpack.c.bf16 %v955_v18, %v954_v17  ;;  %v957_v24 = vld [vmem:[%s2644_s7 + $0x18] sm:$0xff] }
 0x17e   :  { %v401_v33 = vadd.f32 %v2108_v30, %v400_v31  ;;  %v1606_v34 = vpop.f32.mrb[25].mxu0  ;;  %v1011_v31 = vld [vmem:[%s2644_s7 + $0x1c8] sm:$0xff]  ;;  %v956_v23 = vld [vmem:[%s2644_s7 + $0x10] sm:$0xff] }
 0x180   :  { %v426_v35 = vmax.f32 %v419_v29, %v401_v33  ;;  %v993_v29 = vld [vmem:[%s2644_s7 + $0x138] sm:$0xff] }
 0x181   :  { %v405_v36 = vpop.f32.mrb[26].mxu0 }
 0x182   :  { %v406_v37 = vadd.f32 %v2108_v30, %v405_v36  ;;  %v1609_v38 = vpop.f32.mrb[27].mxu0  ;;  %vm433_vm11 = vcmp.ge.f32.partialorder %v426_v35, 0.0  ;;  %v440_v32 = vmul.f32 0.01, %v426_v35  ;;  %v995_v36 = vld [vmem:[%s2644_s7 + $0x148] sm:$0xff] }
 0x183   :  { %v1013_v38 = vld [vmem:[%s2644_s7 + $0x1d8] sm:$0xff] }
 0x184   :  { %v420_v39 = vmax.f32 %v401_v33, %v406_v37  ;;  %v447_v40 = vsel %vm433_vm11, %v426_v35, %v440_v32  ;;  %v1697_v33 = vpack.c.bf16 %v993_v29, %v992_v27  ;;  %v994_v35 = vld [vmem:[%s2644_s7 + $0x140] sm:$0xff]  ;;  %v1012_v37 = vld [vmem:[%s2644_s7 + $0x1d0] sm:$0xff] }
 0x185   :  { %456 = vrot.lane.b32.xlu0 %v447_v40, %s1790_s18  ;;  %v410_v41 = vpop.f32.mrb[28].mxu0  ;;  %v1701_v32 = vpack.c.bf16 %v995_v36, %v994_v35  ;;  %v996_v40 = vld [vmem:[%s2644_s7 + $0x150] sm:$0xff]  ;;  %v958_v29 = vld [vmem:[%s2644_s7 + $0x20] sm:$0xff] }
 0x186   :  { %v411_v42 = vadd.f32 %v2108_v30, %v410_v41  ;;  %v1612_v43 = vpop.f32.mrb[29].mxu0  ;;  %v997_v41 = vld [vmem:[%s2644_s7 + $0x158] sm:$0xff]  ;;  %v960_v36 = vld [vmem:[%s2644_s7 + $0x30] sm:$0xff] }
 0x187   :  { %v1014_v43 = vld [vmem:[%s2644_s7 + $0x1e0] sm:$0xff] }
 0x188   :  { %v427_v45 = vmax.f32 %v420_v39, %v411_v42  ;;  %v1703_v39 = vpack.c.bf16 %v1013_v38, %v1012_v37  ;;  %v1705_v42 = vpack.c.bf16 %v997_v41, %v996_v40  ;;  %v961_v37 = vld [vmem:[%s2644_s7 + $0x38] sm:$0xff]  ;;  %v978_v38 = vld [vmem:[%s2644_s7 + $0xc0] sm:$0xff] }
 0x189   :  { %v962_v41 = vld [vmem:[%s2644_s7 + $0x40] sm:$0xff] }
 0x18a   :  { %vm434_vm12 = vcmp.ge.f32.partialorder %v427_v45, 0.0  ;;  %v441_v46 = vmul.f32 0.01, %v427_v45 }
 0x18c   :  { %v448_v47 = vsel %vm434_vm12, %v427_v45, %v441_v46  ;;  %v1015_v45 = vld [vmem:[%s2644_s7 + $0x1e8] sm:$0xff] }
 0x18d   :  { %468 = vrot.lane.b32.xlu1 %v448_v47, %s1792_s3  ;;  %v1707_v46 = vpack.c.bf16 %v1015_v45, %v1014_v43  ;;  %v998_v47 = vld [vmem:[%s2644_s7 + $0x160] sm:$0xff]  ;;  %v980_v43 = vld [vmem:[%s2644_s7 + $0xd0] sm:$0xff]  ;;  %v981_v45 = vld [vmem:[%s2644_s7 + $0xd8] sm:$0xff] }
 0x1d7   :  { %v453_v49 = vpop.permute.xlu0 %452 }
 0x1d8   :  { %v473_v51 = vsel %vm199_vm5, %v442_v50, %v453_v49  ;;  %v1709_v49 = vpack.c.bf16 %v999_v48, %v998_v47  ;;  %v1671_v47 = vpack.c.bf16 %v981_v45, %v980_v43  ;;  %v964_v48 = vld [vmem:[%s2644_s7 + $0x50] sm:$0xff]  ;;  %v1050_v43 = vld [vmem:[%s2644_s7 + $0x300] sm:$0xff]  ;;  %v1051_v45 = vld [vmem:[%s2644_s7 + $0x308] sm:$0xff] }
 0x1df   :  { %v465_v52 = vpop.permute.xlu1 %464 }
 0x1e0   :  { %v477_v30 = vsel %vm476_vm14, %v473_v51, %v465_v52  ;;  %v1392_v52 = vld [vmem:[%s2645_s4] ss:$0 sm:$0xff] }
 0x1e1   :  { %1620 = vmatmul.mubr.msk.f32.vlgmr.msra.gmra.mrb[0].mxu1 %vm490_vm15, %v477_v30 }
 0x1e2   :  { %1622 = vmatprep.mubr.msk.f32.mxu1 %vm1788_vm0, %v1789_v5  ;;  %1638 = vmatpush1.bf16.msra.mxu1 %v1637_v1 }
 0x1e3   :  { %1640 = vmatprep.subr.bf16.mxu1 %v1639_v4  ;;  %v597_v4 = vld [vmem:[%s2643_s5 + $0x60] sm:$0xff] }
 0x1e7   :  { %v455_v53 = vpop.permute.xlu0 %454 }
 0x1e8   :  { %v474_v54 = vsel %vm199_vm5, %v444_v9, %v455_v53  ;;  %v1683_v9 = vpack.c.bf16 %v1003_v7, %v1002_v6  ;;  %v592_v7 = vld [vmem:[%s2643_s5 + $0x38] sm:$0xff] }
 0x1e9   :  { %v1647_v10 = vpack.c.bf16 %v600_v8, %v592_v7  ;;  %v1066_v7 = vld [vmem:[%s2644_s7 + $0x380] sm:$0xff]  ;;  %v1067_v8 = vld [vmem:[%s2644_s7 + $0x388] sm:$0xff] }
 0x1ea   :  { %1684 = vmatprep.subr.bf16.mxu0 %v1683_v9  ;;  %v1645_v9 = vpack.c.bf16 %v597_v4, %v589_v3  ;;  %v1035_v3 = vld [vmem:[%s2644_s7 + $0x288] sm:$0xff] }
 0x1eb   :  { %1686 = vmatpush3.bf16.msra.mxu0 %v1685_v13  ;;  %v970_v13 = vld [vmem:[%s2644_s7 + $0x80] sm:$0xff] }
 0x1ec   :  { %1688 = vmatprep.subr.bf16.mxu0 %v1687_v14  ;;  %v971_v14 = vld [vmem:[%s2644_s7 + $0x88] sm:$0xff] }
 0x1ed   :  { %v1651_v16 = vpack.c.bf16 %v971_v14, %v970_v13  ;;  %v2428_v13 = vld [vmem:[%s2646_s6] sm:$0xff] }
 0x1ef   :  { %v467_v55 = vpop.permute.xlu1 %466  ;;  %1690 = vmatpush3.bf16.msra.mxu0 %v1689_v19  ;;  %v972_v19 = vld [vmem:[%s2644_s7 + $0x90] sm:$0xff] }
 0x1f0   :  { %v478_v56 = vsel %vm476_vm14, %v474_v54, %v467_v55  ;;  %1692 = vmatprep.subr.bf16.mxu0 %v1691_v20  ;;  %v973_v20 = vld [vmem:[%s2644_s7 + $0x98] sm:$0xff] }
 0x1f1   :  { %1623 = vmatmul.mubr.msk.f32.gmra.mrb[2].mxu1 %vm490_vm15, %v478_v56  ;;  %v1655_v22 = vpack.c.bf16 %v973_v20, %v972_v19 }
 0x1f2   :  { %1625 = vmatprep.mubr.msk.f32.mxu1 %vm1788_vm0, %v1789_v5 }
 0x1f3   :  { %1694 = vmatpush3.bf16.msra.mxu0 %v1693_v25  ;;  %v974_v25 = vld [vmem:[%s2644_s7 + $0xa0] sm:$0xff] }
 0x1f4   :  { %1696 = vmatprep.subr.bf16.mxu0 %v1695_v26  ;;  %v975_v26 = vld [vmem:[%s2644_s7 + $0xa8] sm:$0xff] }
 0x1f5   :  { %v1659_v27 = vpack.c.bf16 %v975_v26, %v974_v25  ;;  %v1018_v25 = vld [vmem:[%s2644_s7 + $0x200] sm:$0xff]  ;;  %v1019_v26 = vld [vmem:[%s2644_s7 + $0x208] sm:$0xff] }
 0x1f7   :  { %v457_v44 = vpop.permute.xlu0 %456  ;;  %1698 = vmatpush3.bf16.msra.mxu0 %v1697_v33  ;;  %v977_v33 = vld [vmem:[%s2644_s7 + $0xb8] sm:$0xff] }
 0x1f8   :  { %v475_v57 = vsel %vm199_vm5, %v446_v28, %v457_v44  ;;  %v1010_v28 = vld [vmem:[%s2644_s7 + $0x1c0] sm:$0xff] }
 0x1f9   :  { %v1699_v34 = vpack.c.bf16 %v1011_v31, %v1010_v28  ;;  %v959_v28 = vld [vmem:[%s2644_s7 + $0x28] sm:$0xff]  ;;  %v976_v31 = vld [vmem:[%s2644_s7 + $0xb0] sm:$0xff] }
 0x1fa   :  { %v1663_v35 = vpack.c.bf16 %v977_v33, %v976_v31 }
 0x1fb   :  { %1700 = vmatprep.subr.bf16.mxu0 %v1699_v34  ;;  %v1661_v34 = vpack.c.bf16 %v959_v28, %v958_v29  ;;  %v1036_v29 = vld [vmem:[%s2644_s7 + $0x290] sm:$0xff]  ;;  %v1037_v28 = vld [vmem:[%s2644_s7 + $0x298] sm:$0xff] }
 0x1fc   :  { %1702 = vmatpush3.bf16.msra.mxu0 %v1701_v32  ;;  %v979_v32 = vld [vmem:[%s2644_s7 + $0xc8] sm:$0xff] }
 0x1fd   :  { %1704 = vmatprep.subr.bf16.mxu0 %v1703_v39  ;;  %v1665_v39 = vpack.c.bf16 %v961_v37, %v960_v36  ;;  %v1667_v40 = vpack.c.bf16 %v979_v32, %v978_v38  ;;  %v1717_v36 = vpack.c.bf16 %v1019_v26, %v1018_v25  ;;  %v1020_v37 = vld [vmem:[%s2644_s7 + $0x210] sm:$0xff]  ;;  %v1021_v38 = vld [vmem:[%s2644_s7 + $0x218] sm:$0xff] }
 0x1ff   :  { %v469_v58 = vpop.permute.xlu1 %468 }
 0x200   :  { %v479_v59 = vsel %vm476_vm14, %v475_v57, %v469_v58  ;;  %1706 = vmatpush3.bf16.msra.mxu0 %v1705_v42  ;;  %v963_v42 = vld [vmem:[%s2644_s7 + $0x48] sm:$0xff] }
 0x201   :  { %1626 = vmatmul.mubr.msk.f32.gmra.mrb[4].mxu1 %vm490_vm15, %v479_v59  ;;  %1708 = vmatprep.subr.bf16.mxu0 %v1707_v46  ;;  %v587_v59 = vld [vmem:[%s2643_s5 + $0x10] sm:$0xff]  ;;  %v1669_v46 = vpack.c.bf16 %v963_v42, %v962_v41  ;;  %v1719_v42 = vpack.c.bf16 %v1037_v28, %v1036_v29  ;;  %v1027_v29 = vld [vmem:[%s2644_s7 + $0x248] sm:$0xff] }
 0x202   :  { %710 = vmatprep.mubr.f32.mxu1 %v1789_v5  ;;  %v1641_v1 = vpack.c.bf16 %v595_v60, %v587_v59  ;;  %v969_v59 = vld [vmem:[%s2644_s7 + $0x78] sm:$0xff] }
 0x204   :  { %1710 = vmatpush3.bf16.msra.mxu0 %v1709_v49  ;;  %v965_v49 = vld [vmem:[%s2644_s7 + $0x58] sm:$0xff] }
 0x2b4   :  { %v566_v50 = vpop.f32.mrb[0].mxu1 }
 0x2b5   :  { %v1621_v51 = vpop.f32.mrb[1].mxu1  ;;  %v567_v53 = vadd.f32 %v1392_v52, %v566_v50  ;;  %v982_v50 = vld [vmem:[%s2644_s7 + $0xe0] sm:$0xff] }
 0x2b6   :  { %v983_v51 = vld [vmem:[%s2644_s7 + $0xe8] sm:$0xff] }
 0x2c4   :  { %v571_v30 = vpop.f32.mrb[2].mxu1 }
 0x2c5   :  { %v572_v54 = vadd.f32 %v1392_v52, %v571_v30  ;;  %v1624_v55 = vpop.f32.mrb[3].mxu1  ;;  %v1675_v30 = vpack.c.bf16 %v983_v51, %v982_v50  ;;  %v1068_v50 = vld [vmem:[%s2644_s7 + $0x390] sm:$0xff]  ;;  %v1069_v51 = vld [vmem:[%s2644_s7 + $0x398] sm:$0xff] }
 0x2c7   :  { %v580_v56 = vmax.f32 %v567_v53, %v572_v54  ;;  %v966_v53 = vld [vmem:[%s2644_s7 + $0x60] sm:$0xff]  ;;  %v967_v54 = vld [vmem:[%s2644_s7 + $0x68] sm:$0xff] }
 0x2c8   :  { %v1677_v55 = vpack.c.bf16 %v967_v54, %v966_v53  ;;  %v1721_v54 = vpack.c.bf16 %v1021_v38, %v1020_v37  ;;  %v1045_v37 = vld [vmem:[%s2644_s7 + $0x2d8] sm:$0xff]  ;;  %v1074_v38 = vld [vmem:[%s2644_s7 + $0x3c0] sm:$0xff] }
 0x2d4   :  { %v576_v44 = vpop.f32.mrb[4].mxu1 }
 0x2d5   :  { %v577_v57 = vadd.f32 %v1392_v52, %v576_v44  ;;  %v1627_v58 = vpop.f32.mrb[5].mxu1  ;;  %v1673_v52 = vpack.c.bf16 %v965_v49, %v964_v48  ;;  %v985_v44 = vld [vmem:[%s2644_s7 + $0xf8] sm:$0xff]  ;;  %v1039_v49 = vld [vmem:[%s2644_s7 + $0x2a8] sm:$0xff] }
 0x2d6   :  { %v968_v58 = vld [vmem:[%s2644_s7 + $0x70] sm:$0xff] }
 0x2d7   :  { %v581_v61 = vmax.f32 %v580_v56, %v577_v57  ;;  %v984_v56 = vld [vmem:[%s2644_s7 + $0xf0] sm:$0xff]  ;;  %v1681_v60 = vpack.c.bf16 %v969_v59, %v968_v58 }
 0x2d8   :  { %v1679_v57 = vpack.c.bf16 %v985_v44, %v984_v56  ;;  %v1022_v44 = vld [vmem:[%s2644_s7 + $0x220] sm:$0xff]  ;;  %v1052_v58 = vld [vmem:[%s2644_s7 + $0x310] sm:$0xff] }
 0x2d9   :  { %vm582_vm0 = vcmp.ge.f32.partialorder %v581_v61, 0.0  ;;  %v583_v0 = vmul.f32 0.01, %v581_v61 }
 0x2db   :  { %v584_v6 = vsel %vm582_vm0, %v581_v61, %v583_v0  ;;  %v1016_v61 = vld [vmem:[%s2644_s7 + $0x1f0] sm:$0xff] }
 0x2dc   :  { %1396 = vmatmul.mubr.msk.f32.vlgmr.msra.gmra.mrb[6].mxu1 %vm476_vm14, %v584_v6  ;;  %v1711_v0 = vpack.c.bf16 %v1017_v62, %v1016_v61  ;;  %v1751_v62 = vpack.c.bf16 %v1069_v51, %v1068_v50  ;;  %v1047_v50 = vld [vmem:[%s2644_s7 + $0x2e8] sm:$0xff]  ;;  %v1076_v51 = vld [vmem:[%s2644_s7 + $0x3d0] sm:$0xff] }
 0x2dd   :  { %1642 = vmatpush1.bf16.msra.mxu1 %v1641_v1  ;;  %781 = vmatprep.mubr.f32.mxu1 %v1789_v5  ;;  %v1000_v1 = vld [vmem:[%s2644_s7 + $0x170] sm:$0xff] }
 0x2de   :  { %1644 = vmatprep.subr.bf16.mxu1 %v1643_v2  ;;  %v1001_v2 = vld [vmem:[%s2644_s7 + $0x178] sm:$0xff]  ;;  %1712 = vmatprep.subr.bf16.mxu0 %v1711_v0  ;;  %v1040_v0 = vld [vmem:[%s2644_s7 + $0x2b0] sm:$0xff] }
 0x2df   :  { %v1713_v4 = vpack.c.bf16 %v1001_v2, %v1000_v1  ;;  %v1041_v1 = vld [vmem:[%s2644_s7 + $0x2b8] sm:$0xff] }
 0x2e0   :  { %1397 = vmatmul.mubr.msk.f32.vlgmr.msra.gmra.mrb[8].mxu1 %vm476_vm14, %v584_v6 }
 0x2e1   :  { %1646 = vmatpush1.bf16.msra.mxu1 %v1645_v9  ;;  %852 = vmatprep.mubr.f32.mxu1 %v1789_v5  ;;  %v1747_v9 = vpack.c.bf16 %v1067_v8, %v1066_v7 }
 0x2e2   :  { %1648 = vmatprep.subr.bf16.mxu1 %v1647_v10  ;;  %1714 = vmatpush3.bf16.msra.mxu0 %v1713_v4  ;;  %v603_v10 = vlaneseq  ;;  %v1071_v4 = vld [vmem:[%s2644_s7 + $0x3a8] sm:$0xff] }
 0x2e3   :  { %1748 = vmatprep.subr.bf16.mxu0 %v1747_v9 }
 0x2e4   :  { %1398 = vmatmul.mubr.msk.f32.vlgmr.msra.gmra.mrb[10].mxu1 %vm476_vm14, %v584_v6  ;;  %v2422_v11 = vshrl.u32 %v603_v10, 7 }
 0x2e5   :  { %1650 = vmatpush1.bf16.msra.mxu1 %v1649_v15  ;;  %923 = vmatprep.mubr.f32.mxu1 %v1789_v5  ;;  %v1657_v5 = vpack.c.bf16 %v957_v24, %v956_v23 }
 0x2e6   :  { %1652 = vmatprep.subr.bf16.mxu1 %v1651_v16  ;;  %v605_v12 = vsub.s32 0, %v2422_v11  ;;  %v609_v14 = vsub.s32 1, %v2422_v11  ;;  %v613_v16 = vsub.s32 2, %v2422_v11  ;;  %v617_v18 = vsub.s32 3, %v2422_v11 }
 0x2e7   :  { %v633_v32 = vsub.s32 7, %v2422_v11 }
 0x2e8   :  { %1399 = vmatmul.mubr.msk.f32.vlgmr.msra.gmra.mrb[12].mxu1 %vm476_vm14, %v584_v6  ;;  %v1715_v6 = vpack.c.bf16 %v1035_v3, %v1034_v63  ;;  %v606_v15 = vrot.slane %v2428_v13, %v605_v12  ;;  %v610_v17 = vrot.slane %v2428_v13, %v609_v14  ;;  %v618_v24 = vrot.slane %v2428_v13, %v617_v18  ;;  %v1053_v63 = vld [vmem:[%s2644_s7 + $0x318] sm:$0xff]  ;;  %v1070_v3 = vld [vmem:[%s2644_s7 + $0x3a0] sm:$0xff]  ;;  %v1024_v14 = vld [vmem:[%s2644_s7 + $0x230] sm:$0xff] }
 0x2e9   :  { %1654 = vmatpush3.bf16.msra.mxu1 %v1653_v21  ;;  %v634_v56 = vrot.slane %v2428_v13, %v633_v32  ;;  %v1753_v10 = vpack.c.bf16 %v1053_v63, %v1052_v58  ;;  %v1727_v12 = vpack.c.bf16 %v1041_v1, %v1040_v0  ;;  %v1755_v18 = vpack.c.bf16 %v1071_v4, %v1070_v3  ;;  %v1075_v32 = vld [vmem:[%s2644_s7 + $0x3c8] sm:$0xff]  ;;  %v1060_v58 = vld [vmem:[%s2644_s7 + $0x350] sm:$0xff]  ;;  %v1049_v63 = vld [vmem:[%s2644_s7 + $0x2f8] sm:$0xff] }
 0x2ea   :  { %1656 = vmatprep.subr.bf16.mxu1 %v1655_v22  ;;  %v614_v22 = vrot.slane %v2428_v13, %v613_v16  ;;  %v1078_v0 = vld [vmem:[%s2644_s7 + $0x3e0] sm:$0xff]  ;;  %v1079_v1 = vld [vmem:[%s2644_s7 + $0x3e8] sm:$0xff] }
 0x2ed   :  { %1658 = vmatpush3.bf16.msra.mxu1 %v1657_v5  ;;  %v625_v5 = vsub.s32 5, %v2422_v11 }
 0x2ee   :  { %1660 = vmatprep.subr.bf16.mxu1 %v1659_v27 }
 0x2ef   :  { %v626_v41 = vrot.slane %v2428_v13, %v625_v5 }
 0x2f1   :  { %1662 = vmatpush3.bf16.msra.mxu1 %v1661_v34 }
 0x2f2   :  { %1664 = vmatprep.subr.bf16.mxu1 %v1663_v35 }
 0x2f5   :  { %1666 = vmatpush3.bf16.msra.mxu1 %v1665_v39 }
 0x2f6   :  { %1668 = vmatprep.subr.bf16.mxu1 %v1667_v40 }
 0x2f9   :  { %1670 = vmatpush3.bf16.msra.mxu1 %v1669_v46  ;;  %v1038_v46 = vld [vmem:[%s2644_s7 + $0x2a0] sm:$0xff] }
 0x2fa   :  { %1672 = vmatprep.subr.bf16.mxu1 %v1671_v47  ;;  %v1723_v61 = vpack.c.bf16 %v1039_v49, %v1038_v46  ;;  %v1058_v46 = vld [vmem:[%s2644_s7 + $0x340] sm:$0xff]  ;;  %v621_v49 = vsub.s32 4, %v2422_v11 }
 0x2fd   :  { %1674 = vmatpush3.bf16.msra.mxu1 %v1673_v52 }
 0x2fe   :  { %1676 = vmatprep.subr.bf16.mxu1 %v1675_v30 }
 0x301   :  { %1678 = vmatpush3.bf16.msra.mxu1 %v1677_v55  ;;  %v1749_v55 = vpack.c.bf16 %v1051_v45, %v1050_v43  ;;  %v1763_v45 = vpack.c.bf16 %v1075_v32, %v1074_v38 }
 0x302   :  { %1680 = vmatprep.subr.bf16.mxu1 %v1679_v57  ;;  %v1023_v57 = vld [vmem:[%s2644_s7 + $0x228] sm:$0xff] }
 0x303   :  { %v1725_v9 = vpack.c.bf16 %v1023_v57, %v1022_v44 }
 0x305   :  { %1682 = vmatpush3.bf16.msra.mxu1 %v1681_v60 }
 0x306   :  { %1716 = vmatprep.subr.bf16.mxu1 %v1715_v6 }
 0x3af   :  { %v712_v19 = vpop.f32.mrb[6].mxu1 }
 0x3b0   :  { %v713_v20 = vadd.f32 %v712_v19, %v606_v15  ;;  %v714_v21 = vpop.f32.mrb[7].mxu1  ;;  %v1025_v15 = vld [vmem:[%s2644_s7 + $0x238] sm:$0xff]  ;;  %v1054_v19 = vld [vmem:[%s2644_s7 + $0x320] sm:$0xff] }
 0x3b1   :  { %v715_v23 = vadd.f32 %v714_v21, %v610_v17  ;;  %v1042_v21 = vld [vmem:[%s2644_s7 + $0x2c0] sm:$0xff]  ;;  %v1729_v26 = vpack.c.bf16 %v1025_v15, %v1024_v14  ;;  %v1080_v15 = vld [vmem:[%s2644_s7 + $0x3f0] sm:$0xff] }
 0x3b2   :  { %v938_v27 = vmul.f32 0.01, %v713_v20  ;;  %vm930_vm1 = vcmp.ge.f32.partialorder %v713_v20, 0.0 }
 0x3b3   :  { %v939_v31 = vmul.f32 0.01, %v715_v23  ;;  %v783_v33 = vpop.f32.mrb[8].mxu1  ;;  %vm931_vm2 = vcmp.ge.f32.partialorder %v715_v23, 0.0 }
 0x3b4   :  { %v784_v34 = vadd.f32 %v783_v33, %v614_v22  ;;  %v785_v35 = vpop.f32.mrb[9].mxu1  ;;  %v946_v48 = vsel %vm930_vm1, %v713_v20, %v938_v27  ;;  %v1055_v20 = vld [vmem:[%s2644_s7 + $0x328] sm:$0xff]  ;;  %v1026_v27 = vld [vmem:[%s2644_s7 + $0x240] sm:$0xff] }
 0x3b5   :  { %v786_v39 = vadd.f32 %v785_v35, %v618_v24  ;;  %v947_v40 = vsel %vm931_vm2, %v715_v23, %v939_v31  ;;  %v1043_v22 = vld [vmem:[%s2644_s7 + $0x2c8] sm:$0xff]  ;;  %v1072_v23 = vld [vmem:[%s2644_s7 + $0x3b0] sm:$0xff]  ;;  %v1073_v24 = vld [vmem:[%s2644_s7 + $0x3b8] sm:$0xff]  ;;  %v1757_v5 = vpack.c.bf16 %v1055_v20, %v1054_v19 }
 0x3b6   :  { %v940_v47 = vmul.f32 0.01, %v784_v34  ;;  %1153 = vmatprep.mubr.f32.mxu1 %v947_v40  ;;  %vm932_vm3 = vcmp.ge.f32.partialorder %v784_v34, 0.0  ;;  %v1731_v31 = vpack.c.bf16 %v1043_v22, %v1042_v21  ;;  %v1759_v33 = vpack.c.bf16 %v1073_v24, %v1072_v23  ;;  %v1057_v35 = vld [vmem:[%s2644_s7 + $0x338] sm:$0xff] }
 0x3b7   :  { %v941_v52 = vmul.f32 0.01, %v786_v39  ;;  %v2477_v30 = vpop.f32.mrb[10].mxu1  ;;  %1154 = vmatmul.mubr.f32.vlgmr.msra.gmra.mrb[14].mxu1 %v946_v48  ;;  %vm933_vm4 = vcmp.ge.f32.partialorder %v786_v39, 0.0  ;;  %v1046_v48 = vld [vmem:[%s2644_s7 + $0x2e0] sm:$0xff] }
 0x3b8   :  { %1718 = vmatpush3.bf16.msra.mxu1 %v1717_v36  ;;  %v856_v53 = vpop.f32.mrb[11].mxu1  ;;  %v948_v2 = vsel %vm932_vm3, %v784_v34, %v940_v47  ;;  %v1056_v34 = vld [vmem:[%s2644_s7 + $0x330] sm:$0xff]  ;;  %v1059_v47 = vld [vmem:[%s2644_s7 + $0x348] sm:$0xff]  ;;  %v1739_v44 = vpack.c.bf16 %v1047_v50, %v1046_v48 }
 0x3b9   :  { %v857_v59 = vadd.f32 %v856_v53, %v626_v41  ;;  %v949_v60 = vsel %vm933_vm4, %v786_v39, %v941_v52  ;;  %1720 = vmatprep.subr.bf16.mxu1 %v1719_v42  ;;  %v1044_v36 = vld [vmem:[%s2644_s7 + $0x2d0] sm:$0xff]  ;;  %v1733_v39 = vpack.c.bf16 %v1027_v29, %v1026_v27  ;;  %v1761_v40 = vpack.c.bf16 %v1057_v35, %v1056_v34  ;;  %v1029_v42 = vld [vmem:[%s2644_s7 + $0x258] sm:$0xff]  ;;  %v1400_v29 = vld [vmem:[%s2647_s8] ss:$0 sm:$0xff] }
 0x3ba   :  { %1223 = vmatprep.mubr.f32.mxu0 %v949_v60  ;;  %v1028_v41 = vld [vmem:[%s2644_s7 + $0x250] sm:$0xff]  ;;  %v1735_v43 = vpack.c.bf16 %v1045_v37, %v1044_v36  ;;  %v1077_v52 = vld [vmem:[%s2644_s7 + $0x3d8] sm:$0xff] }
 0x3bb   :  { %v943_v6 = vmul.f32 0.01, %v857_v59  ;;  %v2505_v7 = vpop.f32.mrb[12].mxu1  ;;  %1224 = vmatmul.mubr.f32.vlgmr.msra.gmra.mrb[30].mxu0 %v948_v2  ;;  %vm935_vm5 = vcmp.ge.f32.partialorder %v857_v59, 0.0  ;;  %v1737_v53 = vpack.c.bf16 %v1029_v42, %v1028_v41  ;;  %v1767_v57 = vpack.c.bf16 %v1077_v52, %v1076_v51  ;;  %v1048_v60 = vld [vmem:[%s2644_s7 + $0x2f0] sm:$0xff] }
 0x3bc   :  { %1722 = vmatpush3.bf16.msra.mxu1 %v1721_v54  ;;  %1750 = vmatpush3.bf16.msra.mxu0 %v1749_v55  ;;  %v927_v8 = vpop.f32.mrb[13].mxu1  ;;  %v1765_v54 = vpack.c.bf16 %v1059_v47, %v1058_v46  ;;  %v1030_v55 = vld [vmem:[%s2644_s7 + $0x260] sm:$0xff]  ;;  %v1743_v4 = vpack.c.bf16 %v1049_v63, %v1048_v60 }
 0x3bd   :  { %v928_v16 = vadd.f32 %v927_v8, %v634_v56  ;;  %1724 = vmatprep.subr.bf16.mxu1 %v1723_v61  ;;  %v951_v17 = vsel %vm935_vm5, %v857_v59, %v943_v6  ;;  %1752 = vmatprep.subr.bf16.mxu0 %v1751_v62  ;;  %v1031_v56 = vld [vmem:[%s2644_s7 + $0x268] sm:$0xff]  ;;  %v1061_v59 = vld [vmem:[%s2644_s7 + $0x358] sm:$0xff]  ;;  %v622_v61 = vrot.slane %v2428_v13, %v621_v49  ;;  %v629_v62 = vsub.s32 6, %v2422_v11  ;;  %v1032_v11 = vld [vmem:[%s2644_s7 + $0x270] sm:$0xff] }
 0x3be   :  { %1293 = vmatprep.mubr.f32.mxu1 %v951_v17  ;;  %v1741_v2 = vpack.c.bf16 %v1031_v56, %v1030_v55  ;;  %v1769_v3 = vpack.c.bf16 %v1061_v59, %v1060_v58  ;;  %v1771_v6 = vpack.c.bf16 %v1079_v1, %v1078_v0  ;;  %v1033_v8 = vld [vmem:[%s2644_s7 + $0x278] sm:$0xff] }
 0x3bf   :  { %v945_v25 = vmul.f32 0.01, %v928_v16  ;;  %vm937_vm6 = vcmp.ge.f32.partialorder %v928_v16, 0.0  ;;  %v630_v14 = vrot.slane %v2428_v13, %v629_v62  ;;  %v1745_v17 = vpack.c.bf16 %v1033_v8, %v1032_v11  ;;  %v1065_v13 = vld [vmem:[%s2644_s7 + $0x378] sm:$0xff] }
 0x3c0   :  { %1726 = vmatpush3.bf16.msra.mxu1 %v1725_v9  ;;  %1754 = vmatpush3.bf16.msra.mxu0 %v1753_v10  ;;  %v1062_v9 = vld [vmem:[%s2644_s7 + $0x360] sm:$0xff]  ;;  %v1063_v10 = vld [vmem:[%s2644_s7 + $0x368] sm:$0xff] }
 0x3c1   :  { %1728 = vmatprep.subr.bf16.mxu1 %v1727_v12  ;;  %1756 = vmatprep.subr.bf16.mxu0 %v1755_v18  ;;  %v953_v28 = vsel %vm937_vm6, %v928_v16, %v945_v25  ;;  %v855_v12 = vadd.f32 %v2477_v30, %v622_v61  ;;  %v1081_v16 = vld [vmem:[%s2644_s7 + $0x3f8] sm:$0xff]  ;;  %v1773_v18 = vpack.c.bf16 %v1063_v10, %v1062_v9  ;;  %v1064_v30 = vld [vmem:[%s2644_s7 + $0x370] sm:$0xff] }
 0x3c2   :  { %1363 = vmatprep.mubr.f32.mxu0 %v953_v28  ;;  %v1775_v19 = vpack.c.bf16 %v1081_v16, %v1080_v15  ;;  %v926_v21 = vadd.f32 %v2505_v7, %v630_v14  ;;  %v1777_v22 = vpack.c.bf16 %v1065_v13, %v1064_v30 }
 0x3c3   :  { %v942_v20 = vmul.f32 0.01, %v855_v12  ;;  %vm934_vm7 = vcmp.ge.f32.partialorder %v855_v12, 0.0 }
 0x3c4   :  { %1730 = vmatpush3.bf16.msra.mxu1 %v1729_v26  ;;  %1758 = vmatpush3.bf16.msra.mxu0 %v1757_v5  ;;  %v944_v23 = vmul.f32 0.01, %v926_v21  ;;  %vm936_vm8 = vcmp.ge.f32.partialorder %v926_v21, 0.0 }
 0x3c5   :  { %1732 = vmatprep.subr.bf16.mxu1 %v1731_v31  ;;  %1760 = vmatprep.subr.bf16.mxu0 %v1759_v33  ;;  %v950_v24 = vsel %vm934_vm7, %v855_v12, %v942_v20 }
 0x3c6   :  { %v952_v25 = vsel %vm936_vm8, %v926_v21, %v944_v23 }
 0x3c8   :  { %1734 = vmatpush3.bf16.msra.mxu1 %v1733_v39  ;;  %1762 = vmatpush3.bf16.msra.mxu0 %v1761_v40 }
 0x3c9   :  { %1736 = vmatprep.subr.bf16.mxu1 %v1735_v43  ;;  %1764 = vmatprep.subr.bf16.mxu0 %v1763_v45 }
 0x3cc   :  { %1738 = vmatpush3.bf16.msra.mxu1 %v1737_v53  ;;  %1766 = vmatpush3.bf16.msra.mxu0 %v1765_v54 }
 0x3cd   :  { %1740 = vmatprep.subr.bf16.mxu1 %v1739_v44  ;;  %1768 = vmatprep.subr.bf16.mxu0 %v1767_v57 }
 0x3d0   :  { %1742 = vmatpush3.bf16.msra.mxu1 %v1741_v2  ;;  %1770 = vmatpush3.bf16.msra.mxu0 %v1769_v3 }
 0x3d1   :  { %1744 = vmatprep.subr.bf16.mxu1 %v1743_v4  ;;  %1772 = vmatprep.subr.bf16.mxu0 %v1771_v6 }
 0x3d4   :  { %1746 = vmatpush3.bf16.msra.mxu1 %v1745_v17  ;;  %1774 = vmatpush3.bf16.msra.mxu0 %v1773_v18 }
 0x3d5   :  { %1776 = vmatprep.subr.bf16.mxu0 %v1775_v19 }
 0x3d7   :  { %1294 = vmatmul.mubr.f32.vlgmr.msra.gmra.mrb[16].mxu1 %v950_v24 }
 0x3d8   :  { %1778 = vmatpush3.bf16.msra.mxu0 %v1777_v22 }
 0x3db   :  { %1364 = vmatmul.mubr.f32.vlgmr.msra.gmra.mrb[32].mxu0 %v952_v25 }
 0x48a   :  { %v1456_v26 = vpop.f32.mrb[14].mxu1 }
 0x48b   :  { %v1457_v5 = vpop.f32.mrb[15].mxu1 }
 0x48c   :  { %v1458_v27 = vadd.f32 %v1457_v5, %v1456_v26 }
 0x48e   :  { %v1491_v7 = vpop.f32.mrb[30].mxu0  ;;  %v1156_v31 = vadd.f32 %v1458_v27, %v1400_v29 }
 0x48f   :  { %v1492_v28 = vpop.f32.mrb[31].mxu0 }
 0x490   :  { %v1493_v33 = vadd.f32 %v1492_v28, %v1491_v7 }
 0x492   :  { %v1226_v34 = vadd.f32 %v1493_v33, %v1156_v31 }
 0x4aa   :  { %v1526_v35 = vpop.f32.mrb[16].mxu1 }
 0x4ab   :  { %v1527_v36 = vpop.f32.mrb[17].mxu1 }
 0x4ac   :  { %v1528_v37 = vadd.f32 %v1527_v36, %v1526_v35 }
 0x4ae   :  { %v1296_v38 = vadd.f32 %v1528_v37, %v1226_v34  ;;  %v1561_v32 = vpop.f32.mrb[32].mxu0 }
 0x4af   :  { %v1562_v39 = vpop.f32.mrb[33].mxu0 }
 0x4b0   :  { %v1563_v40 = vadd.f32 %v1562_v39, %v1561_v32 }
 0x4b2   :  { %v1366_v41 = vadd.f32 %v1563_v40, %v1296_v38 }
 0x4b4   :  { %1370 = vst.msk [vmem:[%s2648_s9] sm:$0xff] %vm1369_vm9, %v1366_v41 }

</bundles_post_ra>
